<compile_context>
chip_gen: v7x
topology: tpu7x:2x2x1
jax: 0.10.0
libtpu: 0.0.40
codegen_flags: <defaults>
</compile_context>

<pallas_src>
import functools

import jax
import jax.numpy as jnp
from jax.experimental import pallas as pl
from jax.experimental.pallas import tpu as pltpu


def _linreg_kernel(w_ref, b_ref, x_ref, o_ref):
    # w_ref / b_ref: (1,) scalars in SMEM.  x_ref / o_ref: (tile_rows, lane) VMEM tiles.
    # Explicit cast keeps the store legal when x/o are narrower than the f32
    # parameters (the multiply promotes to f32).
    o_ref[...] = (w_ref[0] * x_ref[...] + b_ref[0]).astype(o_ref.dtype)


@functools.lru_cache(maxsize=1)
def _device_tuning():
    """Return (pipeline-buffer bytes, TensorCores per chip) for the local TPU."""
    try:
        kind = jax.local_devices()[0].device_kind.lower()
    except Exception:  # defensive fallback
        kind = ""
    if "v7" in kind:
        # 3.2 TB/s HBM: 2 MiB steps leave ~20% per-step overhead -> 8 MiB buffers.
        # Peak 4 buffers = 32 MiB, so the scoped-VMEM limit must be raised.
        return 8 << 20, 2
    if "v6" in kind:
        # ~1.4 TB/s HBM: 4 MiB buffers (peak 16 MiB, under the 32 MiB default).
        return 4 << 20, 1
    # v5e (and unknown chips): 2 MiB buffers, peak 8 MiB under the 16 MiB default.
    return 2 << 20, 1


def _pick_lane(n: int) -> int:
    for lane in (1024, 512, 256, 128):
        if n % lane == 0:
            return lane
    return 128  # ragged: 128-aligned prefix via the kernel, <128-elem tail in JAX


def linear_regression(x: jax.Array, weights: jax.Array, bias: jax.Array) -> jax.Array:
    """Elementwise y = weights * x + bias (scalar weights/bias) via Pallas on TPU."""
    assert weights.shape == (1,) and bias.shape == (1,)
    orig_shape = x.shape
    flat = x.reshape(-1)                        # metadata-only for contiguous input
    n = flat.shape[0]
    if n == 0:
        return x

    itemsize = jnp.dtype(x.dtype).itemsize
    lane = _pick_lane(n)
    n_main = (n // lane) * lane                 # lane-aligned prefix
    tail = n - n_main                           # < 128 elements, ragged inputs only

    if n_main == 0:
        # Fewer than 128 elements: a kernel launch is pure overhead.
        return (weights[0] * flat + bias[0]).astype(x.dtype).reshape(orig_shape)

    rows = n_main // lane
    block_bytes, num_tc = _device_tuning()
    pack = max(8, 32 // itemsize)               # sublane pack: 8 f32, 16 bf16, 32 int8
    tile_rows = max(pack, block_bytes // (lane * itemsize))

    # Keep >= num_tc grid steps on multi-TC chips (v7x) once the input is large
    # enough to be worth splitting, so the "parallel" axis actually shards.
    if num_tc > 1 and n_main * itemsize > (4 << 20):
        tile_rows = min(tile_rows, pl.cdiv(rows, num_tc))

    if tile_rows < rows:
        tile_rows = ((tile_rows + pack - 1) // pack) * pack   # sublane-pack aligned
    tile_rows = min(tile_rows, rows)            # full-extent block is always legal

    grid = (pl.cdiv(rows, tile_rows),)
    block_bytes_actual = tile_rows * lane * itemsize
    # 2x(input + output) double buffers plus headroom for compiler scratch.
    vmem_limit = max(32 << 20, 4 * block_bytes_actual + (8 << 20))

    x2d = flat[:n_main].reshape(rows, lane)     # metadata-only when tail == 0

    out2d = pl.pallas_call(
        _linreg_kernel,
        out_shape=jax.ShapeDtypeStruct((rows, lane), x.dtype),
        grid=grid,
        in_specs=[
            pl.BlockSpec(memory_space=pltpu.SMEM),              # weights (1,)
            pl.BlockSpec(memory_space=pltpu.SMEM),              # bias (1,)
            pl.BlockSpec((tile_rows, lane), lambda i: (i, 0)),  # x tile
        ],
        out_specs=pl.BlockSpec((tile_rows, lane), lambda i: (i, 0)),
        compiler_params=pltpu.CompilerParams(
            dimension_semantics=("parallel",),
            vmem_limit_bytes=vmem_limit,
        ),
    )(weights, bias, x2d)

    out_flat = out2d.reshape(-1)
    if tail:
        # TODO(synk): fold the <128-element tail into the last block with a masked
        # store to drop this concatenate copy entirely.
        tail_out = (weights[0] * flat[n_main:] + bias[0]).astype(x.dtype)
        out_flat = jnp.concatenate([out_flat, tail_out])
    return out_flat.reshape(orig_shape)


if __name__ == "__main__":
    key = jax.random.PRNGKey(0)
    kx, kw, kb = jax.random.split(key, 3)

    # Deterministic "parameters" mirroring nn.Parameter(torch.randn(1)).
    weights = jax.random.normal(kw, (1,), dtype=jnp.float32)
    bias = jax.random.normal(kb, (1,), dtype=jnp.float32)

    # Small primary input (fast path: lane-dense, single tile).
    x = jax.random.normal(kx, (8, 128), dtype=jnp.float32)
    y = jax.block_until_ready(linear_regression(x, weights, bias))
    ref = weights[0] * x + bias[0]
    assert y.shape == x.shape and y.dtype == x.dtype
    assert jnp.allclose(y, ref, atol=1e-6, rtol=1e-6)

    # Extra coverage: multi-row grid path, ragged (prefix + tail) path, and a
    # bf16 input exercising the explicit astype in the kernel body.
    for shape, dtype in (((600, 1024), jnp.float32),
                         ((7, 33), jnp.float32),
                         ((16, 256), jnp.bfloat16)):
        xk = jax.random.normal(kx, shape, dtype=jnp.float32).astype(dtype)
        yk = jax.block_until_ready(linear_regression(xk, weights, bias))
        refk = (weights[0] * xk + bias[0]).astype(dtype)
        assert yk.shape == xk.shape and yk.dtype == dtype
        tol = 1e-6 if dtype == jnp.float32 else 2e-2
        assert jnp.allclose(yk.astype(jnp.float32), refk.astype(jnp.float32),
                            atol=tol, rtol=tol)

    print("KERNEL_OK")
</pallas_src>

<mosaic_0001>
module attributes {stable_mosaic.version = 11 : i64} {
  func.func @_linreg_kernel(%arg0: i32, %arg1: memref<1xf32, #tpu.memory_space<smem>>, %arg2: memref<1xf32, #tpu.memory_space<smem>>, %arg3: memref<1x1024xf32, #tpu.memory_space<vmem>>, %arg4: memref<1x1024xf32, #tpu.memory_space<vmem>>) attributes {dimension_semantics = [#tpu.dimension_semantics<parallel>], iteration_bounds = array<i64: 1>, scalar_prefetch = 0 : i64, scratch_operands = 0 : i64, tpu.core_type = #tpu.core_type<tc>, window_params = [{transform_indices = @transform_0, window_bounds = array<i64: 1>}, {transform_indices = @transform_1, window_bounds = array<i64: 1>}, {transform_indices = @transform_2, window_bounds = array<i64: 1, 1024>}, {transform_indices = @transform_3, window_bounds = array<i64: 1, 1024>}]} {
    %c0 = arith.constant 0 : index
    %0 = memref.load %arg1[%c0] : memref<1xf32, #tpu.memory_space<smem>>
    %c0_0 = arith.constant 0 : index
    %c0_1 = arith.constant 0 : index
    %1 = vector.load %arg3[%c0_0, %c0_1] : memref<1x1024xf32, #tpu.memory_space<vmem>>, vector<1x1024xf32>
    %2 = vector.broadcast %0 : f32 to vector<1x1024xf32>
    %3 = arith.mulf %2, %1 : vector<1x1024xf32>
    %c0_2 = arith.constant 0 : index
    %4 = memref.load %arg2[%c0_2] : memref<1xf32, #tpu.memory_space<smem>>
    %5 = vector.broadcast %4 : f32 to vector<1x1024xf32>
    %6 = arith.addf %3, %5 : vector<1x1024xf32>
    %c0_3 = arith.constant 0 : index
    %c0_4 = arith.constant 0 : index
    %7 = vector.load %arg4[%c0_3, %c0_4] : memref<1x1024xf32, #tpu.memory_space<vmem>>, vector<1x1024xf32>
    tpu.vector_store %arg4[%c0_3, %c0_4], %6 {strides = array<i32>} : memref<1x1024xf32, #tpu.memory_space<vmem>>, vector<1x1024xf32>,
    return
  }
  func.func @transform_0(%arg0: i32) -> i32 {
    %c0_i32 = arith.constant 0 : i32
    %c0_i32_0 = arith.constant 0 : i32
    return %c0_i32 : i32
  }
  func.func @transform_1(%arg0: i32) -> i32 {
    %c0_i32 = arith.constant 0 : i32
    %c0_i32_0 = arith.constant 0 : i32
    return %c0_i32 : i32
  }
  func.func @transform_2(%arg0: i32) -> (i32, i32) {
    %c0_i32 = arith.constant 0 : i32
    %c0_i32_0 = arith.constant 0 : i32
    return %arg0, %c0_i32 : i32, i32
  }
  func.func @transform_3(%arg0: i32) -> (i32, i32) {
    %c0_i32 = arith.constant 0 : i32
    %c0_i32_0 = arith.constant 0 : i32
    return %arg0, %c0_i32 : i32, i32
  }
}

</mosaic_0001>

<bundles_post_ra>
// kernel: tpu_custom_call.1
= control target key start
LH: loop header
LB: loop body
LE: loop exit
PB: predicated region body
PF: predicated region fallthrough
CT: control target
= control target key end

     0   :  { %10 = vsyncpa [#allocation5], 0  ;;  %s154_s0 = inlined_call_operand.<no memory space> [shape: f32[1], index: 0, kind: input, shape index: {}]   ;;  %s155_s1 = inlined_call_operand.<no memory space> [shape: f32[1], index: 1, kind: input, shape index: {}]   ;;  %s156_s2 = inlined_call_operand.hbm [shape: f32[1,1024], index: 2, kind: input, shape index: {}]   ;;  %s157_s3 = inlined_call_operand.hbm [shape: f32[1,1024], index: 3, kind: output, shape index: {}]  }
   0x1   :  { %11 = vsyncpa [#allocation6], 0  ;;  %s102_s12 = smov [#allocation4]   ;;  %s54_s16 = scalar_lea.hbm %s156_s2, 128 }
   0x2   :  { %s22_s13 = sshll.u32 %s102_s12, 4  ;;  %p55_p0 = scmp.ne.s32.totalorder %s156_s2, %s54_s16  ;;  %s23_s13 = int_to_ptr.vmem [resolvable:$true] %s22_s13 }
   0x3   :  { %p58_p1 = scmp.lt.u32.totalorder %s54_s16, %s156_s2 }
   0x5   :  { %p60_p2 = pnand %p58_p1, %p55_p0 }
   0x7   :  { %63 = shalt.err (!%p60_p2)
}
   0x8   :  { %s64_s21 = scalar_lea.vmem %s23_s13, 128  ;;  %p69_p4 = scmp.lt.s32.totalorder %s23_s13, %s23_s13 }
   0x9   :  { %p65_p3 = scmp.ne.s32.totalorder %s23_s13, %s64_s21  ;;  %p70_p5 = scmp.lt.s32.totalorder %s64_s21, %s64_s21 }
   0xb   :  { %p71_p6 = por %p70_p5, %p69_p4 }
   0xd   :  { %p72_p7 = pnand %p71_p6, %p65_p3 }
   0xf   :  { %75 = shalt.err (!%p72_p7)
}
  0x10   :  { %25 = dma.hbm_to_vmem [thread:$0]  %s156_s2, 128, %s23_s13, [#allocation5]  }
  0x11   :  { %98 = dma.done.wait [#allocation5], 128  }
  0x12   :  { %99 = vsyncadd [#allocation5], 4294967168  ;;  %v31_v0 = vstv %s154_s0  ;;  %v30_v1 = vld [vmem:[#allocation4] sm:$0xff]  ;;  %v34_v2 = vstv %s155_s1  ;;  %s103_s28 = smov [#allocation7]  }
  0x13   :  { %s43_s29 = sshll.u32 %s103_s28, 4  ;;  %v32_v3 = vmul.f32 %v31_v0, %v30_v1  ;;  %s44_s29 = int_to_ptr.vmem [resolvable:$true] %s43_s29 }
  0x14   :  { %s76_s30 = scalar_lea.vmem %s44_s29, 128  ;;  %p81_p9 = scmp.lt.s32.totalorder %s44_s29, %s44_s29 }
  0x15   :  { %v35_v4 = vadd.f32 %v34_v2, %v32_v3  ;;  %p77_p8 = scmp.ne.s32.totalorder %s44_s29, %s76_s30  ;;  %p82_p10 = scmp.lt.s32.totalorder %s76_s30, %s76_s30 }
  0x17   :  { %36 = vst [vmem:[#allocation7] sm:$0xff] %v35_v4  ;;  %p83_p11 = por %p82_p10, %p81_p9 }
  0x19   :  { %p84_p12 = pnand %p83_p11, %p77_p8 }
  0x1b   :  { %87 = shalt.err (!%p84_p12)
}
  0x1c   :  { %s88_s4 = scalar_lea.hbm %s157_s3, 128 }
  0x1d   :  { %p89_p13 = scmp.ne.s32.totalorder %s157_s3, %s88_s4  ;;  %p92_p0 = scmp.lt.u32.totalorder %s88_s4, %s157_s3 }
  0x1f   :  { %p94_p1 = pnand %p92_p0, %p89_p13 }
  0x21   :  { %97 = shalt.err (!%p94_p1)
}
  0x22   :  { %46 = dma.vmem_to_hbm [thread:$0]  %s44_s29, 128, %s157_s3, [#allocation6]  }
  0x23   :  { %100 = dma.done.wait [#allocation6], 128  }
  0x24   :  { %101 = vsyncadd [#allocation6], 4294967168 }
  0x25   :  { %50 = vsyncpa [#allocation5], 1 }
  0x26   :  { %51 = vsyncpa [#allocation6], 1 }

</bundles_post_ra>
